<compile_context>
chip_gen: v5e
topology: v5e:2x2
jax: 0.10.0
libtpu: 0.0.40
codegen_flags: <defaults>
</compile_context>

<pallas_src>
import jax
import jax.numpy as jnp
from jax.experimental import pallas as pl
from jax.experimental.pallas import tpu as pltpu


def void_embedding(*args):
    """VoidEmbedding.forward: always returns a 0-element tensor."""
    # TODO(synk): a zero-element output has no Pallas kernel equivalent; returned directly.
    return jnp.zeros((0,), dtype=jnp.float32)


def _fused_embedding_kernel(x_ref, w_ref, b_ref, o_ref):
    """One MXU matmul per row tile: out = x @ W_blockdiag + b (f32 accumulation)."""
    acc = jnp.dot(x_ref[...], w_ref[...], preferred_element_type=jnp.float32)
    o_ref[...] = (acc + b_ref[...]).astype(o_ref.dtype)


def additive_full_embedding(input_sequence, metadata_list, data_params,
                            metadata_params, *, tile_rows=2048):
    """input_sequence: (B, S, F_data); metadata_list[i]: (B, S, F_meta_i).

    data_params = (W_d, b_d); metadata_params[i] = (W_i, b_i) or None.
    None <=> that embedding is a VoidEmbedding (output_features == 0) and is skipped.
    """
    B, S, _ = input_sequence.shape
    M = B * S
    W_d, b_d = data_params
    D_out = W_d.shape[1]
    out_dtype = input_sequence.dtype

    # Skip zero-output (Void) embeddings — the `continue` in the torch forward.
    active = [(m, p) for m, p in zip(metadata_list, metadata_params) if p is not None]

    # ---- Fuse everything into a single matmul (built once in the wrapper) ----
    x2d = input_sequence.reshape(M, -1)
    parts = [x2d] + [m.reshape(M, -1) for m, _ in active]
    X = jnp.concatenate(parts, axis=-1) if len(parts) > 1 else x2d
    W_stack = jnp.concatenate([W_d] + [p[0] for _, p in active], axis=0)
    b_total = b_d
    for _, (_, b_i) in active:
        b_total = b_total + b_i
    F_total = X.shape[1]

    # ---- Lane-dense row folding: output block becomes a full 128-lane slab ----
    fold = 128 // D_out if (D_out < 128 and 128 % D_out == 0) else 1
    K = fold * F_total
    N = fold * D_out

    if fold > 1:
        # Block-diagonal weight (tiny, e.g. 48x128 f32) + tiled bias, built once.
        W_f = jnp.zeros((K, N), W_stack.dtype)
        for j in range(fold):
            W_f = W_f.at[j * F_total:(j + 1) * F_total,
                         j * D_out:(j + 1) * D_out].set(W_stack)
        b_f = jnp.tile(b_total, fold)
    else:
        W_f, b_f = W_stack, b_total
    b_f = b_f.reshape(1, N)

    # ---- Tiling: large folded-row tiles, cdiv grid + zero padding ----
    M_f = pl.cdiv(M, fold)                         # folded row count
    tm = min(max(tile_rows // fold, 8), M_f)
    tm = ((tm + 7) // 8) * 8                       # multiple of 8 sublanes
    Mp_f = pl.cdiv(M_f, tm) * tm                   # padded folded rows
    Mp = Mp_f * fold                               # padded original rows
    if Mp != M:
        X = jnp.pad(X, ((0, Mp - M), (0, 0)))
    Xf = X.reshape(Mp_f, K)                        # contiguous row-major fold

    grid = (Mp_f // tm,)                           # on v7x: >1 step shards over 2 TCs

    out_f = pl.pallas_call(
        _fused_embedding_kernel,
        out_shape=jax.ShapeDtypeStruct((Mp_f, N), out_dtype),
        grid_spec=pl.GridSpec(
            grid=grid,
            in_specs=[
                pl.BlockSpec((tm, K), lambda i: (i, 0)),       # folded input rows
                pl.BlockSpec((K, N), lambda i: (0, 0)),        # block-diag weight (bcast)
                pl.BlockSpec((1, N), lambda i: (0, 0)),        # pre-summed bias (bcast)
            ],
            out_specs=pl.BlockSpec((tm, N), lambda i: (i, 0)),
        ),
        compiler_params=pltpu.CompilerParams(
            dimension_semantics=("parallel",)),
    )(Xf, W_f, b_f)

    out = out_f.reshape(Mp, D_out)[:M]
    return out.reshape(B, S, D_out)


def _reference(input_sequence, metadata_list, data_params, metadata_params):
    W_d, b_d = data_params
    out = input_sequence @ W_d + b_d
    for m, p in zip(metadata_list, metadata_params):
        if p is None:           # VoidEmbedding: contributes nothing
            continue
        W_i, b_i = p
        out = out + m @ W_i + b_i
    return out


if __name__ == "__main__":
    key = jax.random.PRNGKey(0)
    B, S = 2, 8
    F_data, F_meta0, F_meta1 = 4, 3, 5
    D_out = 32

    ks = jax.random.split(key, 10)
    x = jax.random.normal(ks[0], (B, S, F_data), jnp.float32)
    m0 = jax.random.normal(ks[1], (B, S, F_meta0), jnp.float32)
    m1 = jax.random.normal(ks[2], (B, S, F_meta1), jnp.float32)
    m2 = jax.random.normal(ks[3], (B, S, 2), jnp.float32)   # fed to a VoidEmbedding

    # Deterministic synthetic parameters.
    W_d = jax.random.normal(ks[4], (F_data, D_out), jnp.float32) * 0.1
    b_d = jax.random.normal(ks[5], (D_out,), jnp.float32) * 0.1
    W_0 = jax.random.normal(ks[6], (F_meta0, D_out), jnp.float32) * 0.1
    b_0 = jax.random.normal(ks[7], (D_out,), jnp.float32) * 0.1
    W_1 = jax.random.normal(ks[8], (F_meta1, D_out), jnp.float32) * 0.1
    b_1 = jax.random.normal(ks[9], (D_out,), jnp.float32) * 0.1

    metadata_list = [m0, m1, m2]
    metadata_params = [(W_0, b_0), (W_1, b_1), None]  # None => VoidEmbedding, skipped

    # VoidEmbedding forward itself: always a 0-element tensor.
    v = void_embedding(m2)
    assert v.shape == (0,)

    out = additive_full_embedding(x, metadata_list, (W_d, b_d), metadata_params)
    out = jax.block_until_ready(out)

    ref = _reference(x, metadata_list, (W_d, b_d), metadata_params)
    assert out.shape == (B, S, D_out)
    assert jnp.allclose(out, ref, atol=1e-5, rtol=1e-5)
    print("KERNEL_OK")
</pallas_src>

<mosaic_0001>
module attributes {stable_mosaic.version = 11 : i64} {
  func.func @_fused_embedding_kernel(%arg0: i32, %arg1: memref<8x48xf32, #tpu.memory_space<vmem>>, %arg2: memref<48x128xf32, #tpu.memory_space<vmem>>, %arg3: memref<1x128xf32, #tpu.memory_space<vmem>>, %arg4: memref<8x128xf32, #tpu.memory_space<vmem>>) attributes {dimension_semantics = [#tpu.dimension_semantics<parallel>], iteration_bounds = array<i64: 1>, scalar_prefetch = 0 : i64, scratch_operands = 0 : i64, tpu.core_type = #tpu.core_type<tc>, window_params = [{transform_indices = @transform_0, window_bounds = array<i64: 8, 48>}, {pipeline_mode = #tpu.pipeline_mode<synchronous>, transform_indices = @transform_1, window_bounds = array<i64: 48, 128>}, {pipeline_mode = #tpu.pipeline_mode<synchronous>, transform_indices = @transform_2, window_bounds = array<i64: 1, 128>}, {transform_indices = @transform_3, window_bounds = array<i64: 8, 128>}]} {
    %c0 = arith.constant 0 : index
    %c0_0 = arith.constant 0 : index
    %0 = vector.load %arg1[%c0, %c0_0] : memref<8x48xf32, #tpu.memory_space<vmem>>, vector<8x48xf32>
    %c0_1 = arith.constant 0 : index
    %c0_2 = arith.constant 0 : index
    %1 = vector.load %arg2[%c0_1, %c0_2] : memref<48x128xf32, #tpu.memory_space<vmem>>, vector<48x128xf32>
    %cst = arith.constant dense<0.000000e+00> : vector<8x128xf32>
    %2 = tpu.matmul %0, %1, %cst {dimension_numbers = #tpu.dot_dimension_numbers<[1], [0], [0], [1], [0, 0, 1, 1], [], []>} : vector<8x48xf32>, vector<48x128xf32>, vector<8x128xf32> -> vector<8x128xf32>
    %c0_3 = arith.constant 0 : index
    %c0_4 = arith.constant 0 : index
    %3 = vector.load %arg3[%c0_3, %c0_4] : memref<1x128xf32, #tpu.memory_space<vmem>>, vector<1x128xf32>
    %4 = vector.broadcast %3 : vector<1x128xf32> to vector<8x128xf32>
    %5 = arith.addf %2, %4 : vector<8x128xf32>
    %c0_5 = arith.constant 0 : index
    %c0_6 = arith.constant 0 : index
    %6 = vector.load %arg4[%c0_5, %c0_6] : memref<8x128xf32, #tpu.memory_space<vmem>>, vector<8x128xf32>
    tpu.vector_store %arg4[%c0_5, %c0_6], %5 {strides = array<i32>} : memref<8x128xf32, #tpu.memory_space<vmem>>, vector<8x128xf32>,
    return
  }
  func.func @transform_0(%arg0: i32) -> (i32, i32) {
    %c0_i32 = arith.constant 0 : i32
    %c0_i32_0 = arith.constant 0 : i32
    return %arg0, %c0_i32 : i32, i32
  }
  func.func @transform_1(%arg0: i32) -> (i32, i32) {
    %c0_i32 = arith.constant 0 : i32
    %c0_i32_0 = arith.constant 0 : i32
    %c0_i32_1 = arith.constant 0 : i32
    return %c0_i32, %c0_i32_0 : i32, i32
  }
  func.func @transform_2(%arg0: i32) -> (i32, i32) {
    %c0_i32 = arith.constant 0 : i32
    %c0_i32_0 = arith.constant 0 : i32
    %c0_i32_1 = arith.constant 0 : i32
    return %c0_i32, %c0_i32_0 : i32, i32
  }
  func.func @transform_3(%arg0: i32) -> (i32, i32) {
    %c0_i32 = arith.constant 0 : i32
    %c0_i32_0 = arith.constant 0 : i32
    return %arg0, %c0_i32 : i32, i32
  }
}

</mosaic_0001>

<bundles_post_ra>
// kernel: tpu_custom_call.1
= control target key start
LH: loop header
LB: loop body
LE: loop exit
PB: predicated region body
PF: predicated region fallthrough
CT: control target
= control target key end

     0   :  { %8 = vsyncpa [#allocation3], 0  ;;  %s221_s0 = inlined_call_operand.hbm [shape: f32[8,48], index: 0, kind: input, shape index: {}]   ;;  %s222_s1 = inlined_call_operand.hbm [shape: f32[48,128], index: 1, kind: input, shape index: {}]   ;;  %s223_s2 = inlined_call_operand.vmem [shape: f32[1,128], index: 2, kind: input, shape index: {}]   ;;  %s224_s3 = inlined_call_operand.hbm [shape: f32[8,128], index: 3, kind: output, shape index: {}]  }
   0x1   :  { %9 = vsyncpa [#allocation6], 0 }
   0x2   :  { %10 = vsyncpa [#allocation4], 0  ;;  %s16_s14 = sshll.u32 %s221_s0, 4  ;;  %s184_s15 = smov [#allocation2]   ;;  %s17_s14 = int_to_ptr.hbm [resolvable:$true] %s16_s14 }
   0x3   :  { %s18_s16 = sshll.u32 %s184_s15, 4  ;;  %s26_s19 = sshll.u32 %s222_s1, 4  ;;  %s19_s16 = int_to_ptr.vmem [resolvable:$true] %s18_s16  ;;  %s27_s19 = int_to_ptr.hbm [resolvable:$true] %s26_s19 }
   0x4   :  { %21 = dma.hbm_to_vmem [thread:$0]  %s17_s14, 128, %s19_s16, [#allocation3]  }
   0x5   :  { %s185_s20 = smov [#allocation5]   ;;  %s186_s22 = smov 128  }
   0x6   :  { %s28_s21 = sshll.u32 %s185_s20, 4  ;;  %s187_s23 = smov 8   ;;  %s29_s21 = int_to_ptr.vmem [resolvable:$true] %s28_s21 }
   0x7   :  { %34 = dma.hbm_to_vmem [thread:$0]  %s27_s19, 768, %s29_s21, [#allocation6], %s186_s22, %s186_s22, %s187_s23  }
   0x8   :  { %178 = dma.done.wait [#allocation3], 128  }
   0x9   :  { %179 = vsyncadd [#allocation3], 4294967168 }
   0xa   :  { %180 = dma.done.wait [#allocation6], 768  }
   0xb   :  { %181 = vsyncadd [#allocation6], 4294966528  ;;  %v51_v0 = vld [vmem:[#allocation5 + $0x28] sm:$0xff]  ;;  %v50_v1 = vld [vmem:[#allocation5 + $0x20] sm:$0xff]  ;;  %vm56_vm0 = vcmask 392192   ;;  %s188_s24 = smov [#allocation7]  }
   0xc   :  { %70 = vmatpush.msra.mxu0 %v51_v0  ;;  %v49_v2 = vld [vmem:[#allocation5 + $0x18] sm:$0xff]  ;;  %v48_v3 = vld [vmem:[#allocation5 + $0x10] sm:$0xff]  ;;  %v47_v4 = vld [vmem:[#allocation5 + $0x8] sm:$0xff]  ;;  %s86_s25 = sshll.u32 %s188_s24, 4  ;;  %s88_s28 = sshll.u32 %s224_s3, 4  ;;  %s87_s25 = int_to_ptr.vmem [resolvable:$true] %s86_s25  ;;  %s89_s28 = int_to_ptr.hbm [resolvable:$true] %s88_s28 }
   0xd   :  { %v46_v5 = vld [vmem:[#allocation5] sm:$0xff]  ;;  %v45_v6 = vld [vmem:[#allocation2] sm:$0xff] }
   0xe   :  { %71 = vmatpush.msra.mxu0 %v50_v1  ;;  %v105_v7 = vld [vmem:[%s223_s2] ss:$0 sm:$0xff] }
  0x10   :  { %72 = vmatpush.msra.mxu0 %v49_v2 }
  0x12   :  { %73 = vmatpush.msra.mxu0 %v48_v3 }
  0x14   :  { %74 = vmatpush.msra.mxu0 %v47_v4 }
  0x16   :  { %75 = vmatpush.msra.mxu0 %v46_v5 }
  0x17   :  { %99 = vmatmul.msk.f32.vlgmr.msra.gmra.mxu0 %vm56_vm0, %v45_v6 }
  0x94   :  { %v77_v8 = vpop.f32.mrf.mxu0 }
  0x95   :  { %v78_v9 = vadd.f32 %v105_v7, %v77_v8 }
  0x97   :  { %80 = vst [vmem:[#allocation7] sm:$0xff] %v78_v9 }
  0x98   :  { %91 = dma.vmem_to_hbm [thread:$0]  %s87_s25, 128, %s89_s28, [#allocation4]  }
  0x99   :  { %182 = dma.done.wait [#allocation4], 128  }
  0x9a   :  { %183 = vsyncadd [#allocation4], 4294967168 }
  0x9b   :  { %96 = vsyncpa [#allocation3], 1 }
  0x9c   :  { %97 = vsyncpa [#allocation6], 1 }
  0x9d   :  { %98 = vsyncpa [#allocation4], 1 }

</bundles_post_ra>
